<compile_context>
chip_gen: v7x
topology: tpu7x:2x2x1
jax: 0.10.0
libtpu: 0.0.40
codegen_flags: <defaults>
</compile_context>

<pallas_src>
import functools

import jax
import jax.numpy as jnp
from jax.experimental import pallas as pl
from jax.experimental.pallas import tpu as pltpu


def _sub_atomwise_kernel(idx_ref, x_ref, w1_ref, b1_ref, w2_ref, b2_ref,
                         natoms_ref, out_ref, acc_ref, cnt_ref,
                         *, maxm, agg_dtype, do_avg):
    step = pl.program_id(0)

    # ---- init resident accumulators on the first atom tile ----
    @pl.when(step == 0)
    def _init():
        acc_ref[...] = jnp.zeros_like(acc_ref)
        cnt_ref[...] = jnp.zeros_like(cnt_ref)

    # ---- hidden layer: Dense(n_in -> n_hidden) + SiLU ----
    x = x_ref[...]                                            # (TILE_N, n_in)
    h = jnp.dot(x, w1_ref[...], preferred_element_type=jnp.float32) + b1_ref[...]
    h = h * jax.nn.sigmoid(h)                                 # SiLU (EUP exp)

    # ---- per-tile segment sum via one-hot matmul (MXU, not a scatter loop) ----
    tile_n = idx_ref.shape[1]
    idx = idx_ref[...]                                        # (1, TILE_N) int32
    mol_ids = jax.lax.broadcasted_iota(jnp.int32, (maxm, tile_n), 0)
    match = idx == mol_ids                  # padded idx == maxm matches nothing
    onehot = match.astype(agg_dtype)                          # (maxm, TILE_N)
    acc_ref[...] += jnp.dot(onehot, h.astype(agg_dtype),
                            preferred_element_type=jnp.float32)
    cnt_ref[...] += jnp.sum(match.astype(jnp.float32), axis=-1, keepdims=True)

    # ---- epilogue: fused output projection + bias + optional avg ----
    @pl.when(step == pl.num_programs(0) - 1)
    def _finalize():
        agg = jnp.dot(acc_ref[...], w2_ref[...],
                      preferred_element_type=jnp.float32)     # (maxm, n_out)
        agg = agg + cnt_ref[...] * b2_ref[...]                # bias * atom count
        if do_avg:
            agg = agg * pl.reciprocal(natoms_ref[...], approx=True)
        out_ref[...] = agg


def sub_atomwise_forward(x, idx_m, n_atoms, params, *,
                         aggregation_mode="sum", maxm=None,
                         tile_n=512, agg_dtype=jnp.bfloat16):
    """x: (N, n_in) f32; idx_m: (N,) int (sorted); n_atoms: (maxm,) f32.

    maxm defaults to n_atoms.shape[0] (static -> jit-compatible, no host sync).
    agg_dtype: dtype used for the one-hot aggregation matmul (bf16 is fast on
    the MXU but quantizes h before the per-molecule sum; use f32 for strict
    accuracy).
    """
    w1, b1, w2, b2 = params
    n_total, n_in = x.shape
    n_hidden = w1.shape[1]
    n_out = w2.shape[1]
    if maxm is None:
        maxm = n_atoms.shape[0]                 # static shape, no device read

    # Pad the atom axis to a multiple of tile_n.  Padded x rows are zeros and
    # padded idx entries get `maxm`, which one-hot-matches no real molecule,
    # so the ragged last tile cannot corrupt any molecule's sum.
    n_pad = pl.cdiv(n_total, tile_n) * tile_n
    if n_pad != n_total:
        x = jnp.pad(x, ((0, n_pad - n_total), (0, 0)))
        idx_m = jnp.pad(idx_m, (0, n_pad - n_total), constant_values=maxm)
    idx2d = idx_m.reshape(1, n_pad).astype(jnp.int32)
    natoms2d = n_atoms.reshape(maxm, 1).astype(jnp.float32)
    num_tiles = n_pad // tile_n

    kernel = functools.partial(
        _sub_atomwise_kernel,
        maxm=maxm, agg_dtype=agg_dtype, do_avg=(aggregation_mode == "avg"))

    def const(shape):
        return pl.BlockSpec(shape, lambda i: (0,) * len(shape))

    # Rough VMEM budget using *padded* lane widths (x is double-buffered).
    lane = 128
    pad128 = lambda v: ((v + lane - 1) // lane) * lane
    agg_bytes = jnp.dtype(agg_dtype).itemsize
    est = (2 * tile_n * pad128(n_in) * 4          # x tile, double buffered
           + tile_n * pad128(n_hidden) * 4        # h
           + max(maxm, 8) * tile_n * agg_bytes    # one-hot
           + max(maxm, 8) * pad128(n_hidden) * 4  # accumulator
           + 2 * 8 * tile_n * 4                   # idx tile
           + pad128(n_in) * pad128(n_hidden) * 4)  # weights (resident)
    vmem_limit = min(max(2 * est, 8 * 1024 * 1024), 48 * 1024 * 1024)

    return pl.pallas_call(
        kernel,
        grid=(num_tiles,),
        in_specs=[
            pl.BlockSpec((1, tile_n), lambda i: (0, i)),      # idx_m tile
            pl.BlockSpec((tile_n, n_in), lambda i: (i, 0)),   # x tile (pipelined)
            const(w1.shape), const(b1.shape),                 # weights resident
            const(w2.shape), const(b2.shape),
            const((maxm, 1)),                                 # n_atoms (avg only)
        ],
        out_specs=const((maxm, n_out)),                       # resident output
        out_shape=jax.ShapeDtypeStruct((maxm, n_out), jnp.float32),
        scratch_shapes=[
            pltpu.VMEM((maxm, n_hidden), jnp.float32),        # acc_h
            pltpu.VMEM((maxm, 1), jnp.float32),               # atom counts
        ],
        compiler_params=pltpu.CompilerParams(
            dimension_semantics=("arbitrary",),
            vmem_limit_bytes=vmem_limit),
    )(idx2d, x, w1, b1, w2, b2, natoms2d)


def build_mlp_params(key, n_in, n_out=1, n_layers=2):
    """Pyramidal MLP (n_hidden=None): widths halve per layer, floor n_out."""
    widths = []
    c = n_in
    for _ in range(n_layers):
        widths.append(c)
        c = max(n_out, c // 2)
    widths.append(n_out)
    k1, k2, k3, k4 = jax.random.split(key, 4)
    w1 = jax.random.normal(k1, (widths[0], widths[1]), jnp.float32) * 0.2
    b1 = jax.random.normal(k2, (1, widths[1]), jnp.float32) * 0.1
    w2 = jax.random.normal(k3, (widths[1], widths[2]), jnp.float32) * 0.2
    b2 = jax.random.normal(k4, (1, widths[2]), jnp.float32) * 0.1
    return w1, b1, w2, b2


def reference_forward(x, idx_m, n_atoms, params, maxm, aggregation_mode="sum"):
    w1, b1, w2, b2 = params
    h = jax.nn.silu(x @ w1 + b1)
    y = h @ w2 + b2
    agg = jax.ops.segment_sum(y, idx_m, num_segments=maxm)
    if aggregation_mode == "avg":
        agg = agg / n_atoms[:, None]
    return agg


if __name__ == "__main__":
    key = jax.random.PRNGKey(0)
    n_in, n_out = 32, 1

    # 5 molecules, 300 atoms total -> 3 atom tiles of 128 (exercises the
    # resident accumulator across tiles and the ragged-tile masking).
    counts = [70, 50, 90, 60, 30]
    maxm = len(counts)
    n_total = sum(counts)

    kx, kp = jax.random.split(key)
    x = jax.random.normal(kx, (n_total, n_in), jnp.float32)
    idx_m = jnp.concatenate(
        [jnp.full((c,), m, dtype=jnp.int32) for m, c in enumerate(counts)])
    n_atoms = jnp.array(counts, jnp.float32)
    params = build_mlp_params(kp, n_in, n_out=n_out)

    ref_sum = reference_forward(x, idx_m, n_atoms, params, maxm, "sum")
    ref_avg = reference_forward(x, idx_m, n_atoms, params, maxm, "avg")

    # f32 aggregation path: matches the PyTorch semantics tightly.
    out_f32 = sub_atomwise_forward(x, idx_m, n_atoms, params,
                                   aggregation_mode="sum",
                                   tile_n=128, agg_dtype=jnp.float32)
    # bf16 aggregation path (default, fastest on the MXU): small quantization
    # of h before the per-molecule sum, checked with a loose tolerance.
    out_bf16 = sub_atomwise_forward(x, idx_m, n_atoms, params,
                                    aggregation_mode="sum",
                                    tile_n=128, agg_dtype=jnp.bfloat16)
    out_avg = sub_atomwise_forward(x, idx_m, n_atoms, params,
                                   aggregation_mode="avg",
                                   tile_n=128, agg_dtype=jnp.bfloat16)
    jax.block_until_ready((out_f32, out_bf16, out_avg))

    assert out_f32.shape == (maxm, n_out)
    assert jnp.allclose(out_f32, ref_sum, atol=1e-3, rtol=1e-3), (out_f32, ref_sum)
    assert jnp.allclose(out_bf16, ref_sum, atol=5e-2, rtol=5e-2), (out_bf16, ref_sum)
    assert jnp.allclose(out_avg, ref_avg, atol=1e-2, rtol=1e-2), (out_avg, ref_avg)
    print("KERNEL_OK")
</pallas_src>

<mosaic_0001>
module attributes {stable_mosaic.version = 11 : i64} {
  func.func @_sub_atomwise_kernel(%arg0: i32, %arg1: memref<1x128xi32, #tpu.memory_space<vmem>>, %arg2: memref<128x32xf32, #tpu.memory_space<vmem>>, %arg3: memref<32x16xf32, #tpu.memory_space<vmem>>, %arg4: memref<1x16xf32, #tpu.memory_space<vmem>>, %arg5: memref<16x1xf32, #tpu.memory_space<vmem>>, %arg6: memref<1x1xf32, #tpu.memory_space<vmem>>, %arg7: memref<5x1xf32, #tpu.memory_space<vmem>>, %arg8: memref<5x1xf32, #tpu.memory_space<vmem>>, %arg9: memref<5x16xf32, #tpu.memory_space<vmem>>, %arg10: memref<5x1xf32, #tpu.memory_space<vmem>>) attributes {dimension_semantics = [#tpu.dimension_semantics<arbitrary>], iteration_bounds = array<i64: 3>, scalar_prefetch = 0 : i64, scratch_operands = 2 : i64, tpu.core_type = #tpu.core_type<tc>, window_params = [{transform_indices = @transform_0, window_bounds = array<i64: 1, 128>}, {transform_indices = @transform_1, window_bounds = array<i64: 128, 32>}, {pipeline_mode = #tpu.pipeline_mode<synchronous>, transform_indices = @transform_2, window_bounds = array<i64: 32, 16>}, {pipeline_mode = #tpu.pipeline_mode<synchronous>, transform_indices = @transform_3, window_bounds = array<i64: 1, 16>}, {pipeline_mode = #tpu.pipeline_mode<synchronous>, transform_indices = @transform_4, window_bounds = array<i64: 16, 1>}, {pipeline_mode = #tpu.pipeline_mode<synchronous>, transform_indices = @transform_5, window_bounds = array<i64: 1, 1>}, {pipeline_mode = #tpu.pipeline_mode<synchronous>, transform_indices = @transform_6, window_bounds = array<i64: 5, 1>}, {pipeline_mode = #tpu.pipeline_mode<synchronous>, transform_indices = @transform_7, window_bounds = array<i64: 5, 1>}]} {
    %c0_i32 = arith.constant 0 : i32
    %0 = arith.cmpi eq, %arg0, %c0_i32 : i32
    %1 = arith.extui %0 : i1 to i32
    %c0_i32_0 = arith.constant 0 : i32
    %2 = arith.cmpi ne, %1, %c0_i32_0 : i32
    scf.if %2 {
      %cst_20 = arith.constant 0.000000e+00 : f32
      %35 = vector.broadcast %cst_20 : f32 to vector<5x16xf32>
      %c0_21 = arith.constant 0 : index
      %c0_22 = arith.constant 0 : index
      %36 = vector.load %arg9[%c0_21, %c0_22] : memref<5x16xf32, #tpu.memory_space<vmem>>, vector<5x16xf32>
      tpu.vector_store %arg9[%c0_21, %c0_22], %35 {strides = array<i32>} : memref<5x16xf32, #tpu.memory_space<vmem>>, vector<5x16xf32>,
      %cst_23 = arith.constant 0.000000e+00 : f32
      %37 = vector.broadcast %cst_23 : f32 to vector<5x1xf32>
      %c0_24 = arith.constant 0 : index
      %c0_25 = arith.constant 0 : index
      %38 = vector.load %arg10[%c0_24, %c0_25] : memref<5x1xf32, #tpu.memory_space<vmem>>, vector<5x1xf32>
      tpu.vector_store %arg10[%c0_24, %c0_25], %37 {strides = array<i32>} : memref<5x1xf32, #tpu.memory_space<vmem>>, vector<5x1xf32>,
    } else {
    }
    %c0 = arith.constant 0 : index
    %c0_1 = arith.constant 0 : index
    %3 = vector.load %arg2[%c0, %c0_1] : memref<128x32xf32, #tpu.memory_space<vmem>>, vector<128x32xf32>
    %c0_2 = arith.constant 0 : index
    %c0_3 = arith.constant 0 : index
    %4 = vector.load %arg3[%c0_2, %c0_3] : memref<32x16xf32, #tpu.memory_space<vmem>>, vector<32x16xf32>
    %cst = arith.constant dense<0.000000e+00> : vector<128x16xf32>
    %5 = tpu.matmul %3, %4, %cst {dimension_numbers = #tpu.dot_dimension_numbers<[1], [0], [0], [1], [0, 0, 1, 1], [], []>} : vector<128x32xf32>, vector<32x16xf32>, vector<128x16xf32> -> vector<128x16xf32>
    %c0_4 = arith.constant 0 : index
    %c0_5 = arith.constant 0 : index
    %6 = vector.load %arg4[%c0_4, %c0_5] : memref<1x16xf32, #tpu.memory_space<vmem>>, vector<1x16xf32>
    %7 = vector.broadcast %6 : vector<1x16xf32> to vector<128x16xf32>
    %8 = arith.addf %5, %7 : vector<128x16xf32>
    %9 = arith.negf %8 : vector<128x16xf32>
    %10 = math.exp %9 : vector<128x16xf32>
    %cst_6 = arith.constant 1.000000e+00 : f32
    %11 = vector.broadcast %cst_6 : f32 to vector<128x16xf32>
    %12 = arith.addf %11, %10 : vector<128x16xf32>
    %13 = arith.divf %11, %12 : vector<128x16xf32>
    %14 = arith.mulf %8, %13 : vector<128x16xf32>
    %c0_7 = arith.constant 0 : index
    %c0_8 = arith.constant 0 : index
    %15 = vector.load %arg1[%c0_7, %c0_8] : memref<1x128xi32, #tpu.memory_space<vmem>>, vector<1x128xi32>
    %16 = tpu.iota {dimensions = array<i32: 0>} : vector<5x128xi32>
    %17 = vector.broadcast %15 : vector<1x128xi32> to vector<5x128xi32>
    %18 = arith.cmpi eq, %17, %16 : vector<5x128xi32>
    %19 = arith.extui %18 : vector<5x128xi1> to vector<5x128xi32>
    %20 = arith.sitofp %19 : vector<5x128xi32> to vector<5x128xf32>
    %c0_9 = arith.constant 0 : index
    %c0_10 = arith.constant 0 : index
    %21 = vector.load %arg9[%c0_9, %c0_10] : memref<5x16xf32, #tpu.memory_space<vmem>>, vector<5x16xf32>
    %cst_11 = arith.constant dense<0.000000e+00> : vector<5x16xf32>
    %22 = tpu.matmul %20, %14, %cst_11 {dimension_numbers = #tpu.dot_dimension_numbers<[1], [0], [0], [1], [0, 0, 1, 1], [], []>} : vector<5x128xf32>, vector<128x16xf32>, vector<5x16xf32> -> vector<5x16xf32>
    %23 = arith.addf %21, %22 : vector<5x16xf32>
    %c0_12 = arith.constant 0 : index
    %c0_13 = arith.constant 0 : index
    %24 = vector.load %arg9[%c0_12, %c0_13] : memref<5x16xf32, #tpu.memory_space<vmem>>, vector<5x16xf32>
    tpu.vector_store %arg9[%c0_12, %c0_13], %23 {strides = array<i32>} : memref<5x16xf32, #tpu.memory_space<vmem>>, vector<5x16xf32>,
    %c0_14 = arith.constant 0 : index
    %c0_15 = arith.constant 0 : index
    %25 = vector.load %arg10[%c0_14, %c0_15] : memref<5x1xf32, #tpu.memory_space<vmem>>, vector<5x1xf32>
    %26 = arith.extui %18 : vector<5x128xi1> to vector<5x128xi32>
    %27 = arith.sitofp %26 : vector<5x128xi32> to vector<5x128xf32>
    %cst_16 = arith.constant dense<0.000000e+00> : vector<5xf32>
    %28 = vector.multi_reduction <add>, %27, %cst_16 [1] : vector<5x128xf32> to vector<5xf32>
    %29 = vector.shape_cast %28 : vector<5xf32> to vector<5x1xf32>
    %30 = arith.addf %25, %29 : vector<5x1xf32>
    %c0_17 = arith.constant 0 : index
    %c0_18 = arith.constant 0 : index
    %31 = vector.load %arg10[%c0_17, %c0_18] : memref<5x1xf32, #tpu.memory_space<vmem>>, vector<5x1xf32>
    tpu.vector_store %arg10[%c0_17, %c0_18], %30 {strides = array<i32>} : memref<5x1xf32, #tpu.memory_space<vmem>>, vector<5x1xf32>,
    %c2_i32 = arith.constant 2 : i32
    %32 = arith.cmpi eq, %arg0, %c2_i32 : i32
    %33 = arith.extui %32 : i1 to i32
    %c0_i32_19 = arith.constant 0 : i32
    %34 = arith.cmpi ne, %33, %c0_i32_19 : i32
    scf.if %34 {
      %c0_20 = arith.constant 0 : index
      %c0_21 = arith.constant 0 : index
      %35 = vector.load %arg9[%c0_20, %c0_21] : memref<5x16xf32, #tpu.memory_space<vmem>>, vector<5x16xf32>
      %c0_22 = arith.constant 0 : index
      %c0_23 = arith.constant 0 : index
      %36 = vector.load %arg5[%c0_22, %c0_23] : memref<16x1xf32, #tpu.memory_space<vmem>>, vector<16x1xf32>
      %cst_24 = arith.constant dense<0.000000e+00> : vector<5x1xf32>
      %37 = tpu.matmul %35, %36, %cst_24 {dimension_numbers = #tpu.dot_dimension_numbers<[1], [0], [0], [1], [0, 0, 1, 1], [], []>} : vector<5x16xf32>, vector<16x1xf32>, vector<5x1xf32> -> vector<5x1xf32>
      %c0_25 = arith.constant 0 : index
      %c0_26 = arith.constant 0 : index
      %38 = vector.load %arg10[%c0_25, %c0_26] : memref<5x1xf32, #tpu.memory_space<vmem>>, vector<5x1xf32>
      %c0_27 = arith.constant 0 : index
      %c0_28 = arith.constant 0 : index
      %39 = vector.load %arg6[%c0_27, %c0_28] : memref<1x1xf32, #tpu.memory_space<vmem>>, vector<1x1xf32>
      %40 = vector.broadcast %39 : vector<1x1xf32> to vector<5x1xf32>
      %41 = arith.mulf %38, %40 : vector<5x1xf32>
      %42 = arith.addf %37, %41 : vector<5x1xf32>
      %c0_29 = arith.constant 0 : index
      %c0_30 = arith.constant 0 : index
      %43 = vector.load %arg8[%c0_29, %c0_30] : memref<5x1xf32, #tpu.memory_space<vmem>>, vector<5x1xf32>
      tpu.vector_store %arg8[%c0_29, %c0_30], %42 {strides = array<i32>} : memref<5x1xf32, #tpu.memory_space<vmem>>, vector<5x1xf32>,
    } else {
    }
    return
  }
  func.func @transform_0(%arg0: i32) -> (i32, i32) {
    %c0_i32 = arith.constant 0 : i32
    %c0_i32_0 = arith.constant 0 : i32
    return %c0_i32, %arg0 : i32, i32
  }
  func.func @transform_1(%arg0: i32) -> (i32, i32) {
    %c0_i32 = arith.constant 0 : i32
    %c0_i32_0 = arith.constant 0 : i32
    return %arg0, %c0_i32 : i32, i32
  }
  func.func @transform_2(%arg0: i32) -> (i32, i32) {
    %c0_i32 = arith.constant 0 : i32
    %c0_i32_0 = arith.constant 0 : i32
    %c0_i32_1 = arith.constant 0 : i32
    return %c0_i32, %c0_i32_0 : i32, i32
  }
  func.func @transform_3(%arg0: i32) -> (i32, i32) {
    %c0_i32 = arith.constant 0 : i32
    %c0_i32_0 = arith.constant 0 : i32
    %c0_i32_1 = arith.constant 0 : i32
    return %c0_i32, %c0_i32_0 : i32, i32
  }
  func.func @transform_4(%arg0: i32) -> (i32, i32) {
    %c0_i32 = arith.constant 0 : i32
    %c0_i32_0 = arith.constant 0 : i32
    %c0_i32_1 = arith.constant 0 : i32
    return %c0_i32, %c0_i32_0 : i32, i32
  }
  func.func @transform_5(%arg0: i32) -> (i32, i32) {
    %c0_i32 = arith.constant 0 : i32
    %c0_i32_0 = arith.constant 0 : i32
    %c0_i32_1 = arith.constant 0 : i32
    return %c0_i32, %c0_i32_0 : i32, i32
  }
  func.func @transform_6(%arg0: i32) -> (i32, i32) {
    %c0_i32 = arith.constant 0 : i32
    %c0_i32_0 = arith.constant 0 : i32
    %c0_i32_1 = arith.constant 0 : i32
    return %c0_i32, %c0_i32_0 : i32, i32
  }
  func.func @transform_7(%arg0: i32) -> (i32, i32) {
    %c0_i32 = arith.constant 0 : i32
    %c0_i32_0 = arith.constant 0 : i32
    %c0_i32_1 = arith.constant 0 : i32
    return %c0_i32, %c0_i32_0 : i32, i32
  }
}

</mosaic_0001>

<bundles_post_ra>
// kernel: tpu_custom_call.1
= control target key start
LH: loop header
LB: loop body
LE: loop exit
PB: predicated region body
PF: predicated region fallthrough
CT: control target
= control target key end

     0   :  { %s1179_s26 = smov 0   ;;  %s1373_s0 = inlined_call_operand.vmem [shape: s32[1,384], index: 0, kind: input, shape index: {}]   ;;  %s1374_s1 = inlined_call_operand.vmem [shape: f32[384,32], index: 1, kind: input, shape index: {}]   ;;  %s1375_s2 = inlined_call_operand.vmem [shape: f32[32,16], index: 2, kind: input, shape index: {}]   ;;  %s1376_s3 = inlined_call_operand.vmem [shape: f32[1,16], index: 3, kind: input, shape index: {}]   ;;  %s1377_s4 = inlined_call_operand.vmem [shape: f32[16,1], index: 4, kind: input, shape index: {}]   ;;  %s1378_s5 = inlined_call_operand.<no memory space> [shape: f32[1,1], index: 5, kind: input, shape index: {}]   ;;  %s1379_s6 = inlined_call_operand.vmem [shape: f32[5,1], index: 6, kind: input, shape index: {}]   ;;  %s1380_s7 = inlined_call_operand.vmem [shape: f32[5,1], index: 7, kind: output, shape index: {}]  }
   0x1   :  { %v12_v0 = vstv %s1378_s5 }
   0x2   :  { %13 = vst [vmem:[#allocation4] sm:$0x1] %v12_v0 }
   0x3 LB: > { %s1185_s27 = sadd.s32 4294967295, %s1126_s26   ;;  %p846_p0 = scmp.ge.s32.totalorder %s1126_s26, 1  ;;  %s1126_s26 = sphi %s1179_s26, %s19_s26  }
   0x4   : > { %p243_p1 = scmp.lt.s32.totalorder %s1126_s26, 4 }
   0x6   : > { %p244_p2 = pnand %p846_p0, %p243_p1 }
   0x7   : > { %p273_p3 = scmp.lt.s32.totalorder (!%p244_p2), %s1185_s27, 2  ;;  %s847_s5 = sshll.u32 (!%p244_p2), %s1185_s27, 4 }
   0x8   : > { %247 = sbr.rel (%p244_p2) target bundleno = 749 (0x2ed), region = 48  ;;  %p277_p4 = scmp.lt.s32.totalorder (!%p244_p2), %s847_s5, 47 }
   0x9   : > { %p849_p5 = scmp.ne.s32.totalorder (!%p244_p2), %s1185_s27, 0 }
   0xf   : > { %s1192_s6 = scalar_select %p273_p3, %s1185_s27, 2 }
  0x10   : > { %s1382_s5 = smov (!%p277_p4, %s847_s5), 47  ;;  %285 = sbr.rel (%p849_p5) target bundleno = 23 (0x17), region = 52 }
  0x11   : > { %s275_s30 = scalar_lea.vmem %s1373_s0, %s1192_s6  ;;  %s848_s8 = sshll.u32 %s1382_s5, 3  ;;  %vm286_vm0 = vcmask (!%p849_p5), 126976   ;;  %vm288_vm1 = vcmask (!%p849_p5), 4096   ;;  %v1128_v1 = vmov (!%p849_p5), 0.0  }
  0x12   : > { %s1201_s11 = scalar_lea.vmem %s1374_s1, %s848_s8  ;;  %287 = vst.msk [vmem:[#allocation2] sm:$0x1f] (!%p849_p5), %vm286_vm0, %v1128_v1 }
  0x13   : > { %289 = vst.msk [vmem:[#allocation3] sm:$0x1f] (!%p849_p5), %vm288_vm1, %v1128_v1 }
  0x17 PF: > { %v306_v2 = vld [vmem:[%s1375_s2] sm:$0xff]  ;;  %v307_v3 = vld [vmem:[%s1375_s2 + $0x8] sm:$0xff]  ;;  %v308_v4 = vld [vmem:[%s1375_s2 + $0x10] sm:$0xff]  ;;  %vm317_vm2 = vcmask 261120   ;;  %v1129_v24 = vmov 0.0|0.0   ;;  %v624_v25 = vlaneseq  ;;  %vm1130_vm3 = vmmov 0  }
  0x18   : > { %v1005_v5 = vpack.c.bf16 %v307_v3, %v306_v2  ;;  %v309_v6 = vld [vmem:[%s1375_s2 + $0x18] sm:$0xff]  ;;  %v290_v7 = vld [vmem:[%s1201_s11] sm:$0xff]  ;;  %v291_v9 = vld [vmem:[%s1201_s11 + $0x8] sm:$0xff]  ;;  %1013 = vmatprep.subr.bf16.mxu1 %v1129_v24  ;;  %v1131_v28 = vmov 0.0   ;;  %vm708_vm5 = vcmask 1044480   ;;  %vm713_vm6 = vcmask 4096  }
  0x19   : > { %v1009_v8 = vpack.c.bf16 %v309_v6, %v308_v4  ;;  %939 = vmatprep.mubr.msk.f32.mxu0 %vm317_vm2, %v290_v7  ;;  %v292_v10 = vld [vmem:[%s1201_s11 + $0x10] sm:$0xff]  ;;  %v293_v11 = vld [vmem:[%s1201_s11 + $0x18] sm:$0xff]  ;;  %v294_v12 = vld [vmem:[%s1201_s11 + $0x20] sm:$0xff]  ;;  %v1256_v27 = vshrl.u32 %v624_v25, 7  ;;  %995 = vmatprep.mubr.msk.f32.mxu1 %vm1130_vm3, %v1131_v28  ;;  %vm705_vm7 = vcmask 126976   ;;  %p886_p6 = scmp.ne.s32.totalorder %s1185_s27, 2 }
  0x1a   : > { %1006 = vmatprep.subr.bf16.mxu0 %v1005_v5  ;;  %v295_v13 = vld [vmem:[%s1201_s11 + $0x28] sm:$0xff]  ;;  %v296_v14 = vld [vmem:[%s1201_s11 + $0x30] sm:$0xff]  ;;  %v297_v15 = vld [vmem:[%s1201_s11 + $0x38] sm:$0xff]  ;;  %vm1134_vm8 = vmmov (!%p886_p6), 0   ;;  %vm731_vm9 = vcmask (!%p886_p6), 130048  }
  0x1b   : > { %1008 = vmatpush3.bf16.msra.mxu0 %v1005_v5  ;;  %v298_v16 = vld [vmem:[%s1201_s11 + $0x40] sm:$0xff]  ;;  %v299_v17 = vld [vmem:[%s1201_s11 + $0x48] sm:$0xff]  ;;  %v300_v18 = vld [vmem:[%s1201_s11 + $0x50] sm:$0xff] }
  0x1c   : > { %1010 = vmatprep.subr.bf16.mxu0 %v1009_v8  ;;  %v301_v19 = vld [vmem:[%s1201_s11 + $0x58] sm:$0xff]  ;;  %v302_v20 = vld [vmem:[%s1201_s11 + $0x60] sm:$0xff]  ;;  %v303_v21 = vld [vmem:[%s1201_s11 + $0x68] sm:$0xff] }
  0x1d   : > { %v304_v22 = vld [vmem:[%s1201_s11 + $0x70] sm:$0xff]  ;;  %v305_v23 = vld [vmem:[%s1201_s11 + $0x78] sm:$0xff]  ;;  %v1254_v26 = vld [vmem:[%s275_s30] ss:$0 sm:$0xff] }
  0x1e   : > { %vm630_vm4 = vcmp.eq.s32.totalorder %v1254_v26, %v1256_v27  ;;  %v1266_v31 = vld [vmem:[%s1376_s3] ss:$0 sm:$0xff]  ;;  %v721_v26 = vld [vmem:[%s1377_s4 + $0x8] sm:$0xff] (!%p886_p6)  ;;  %v1133_v27 = vmov (!%p886_p6), 0.0|0.0  }
  0x1f   : > { %1012 = vmatpush3.bf16.msra.mxu0 %v1009_v8  ;;  %v884_v29 = vsel %vm630_vm4, 1.0, %v1131_v28 }
  0x20   : > { %v709_v30 = vsel %vm708_vm5, %v884_v29, 0.0  ;;  %1037 = vmatprep.subr.bf16.mxu0 (!%p886_p6), %v1133_v27 }
  0x21   : > { %710 = vadd.xlane.f32.xlu0 %v709_v30 }
  0x22   : > { %940 = vmatmul.mubr.msk.f32.vlgmr.msra.gmra.mrb[0].mxu0 %vm317_vm2, %v291_v9 }
  0x23   : > { %942 = vmatprep.mubr.msk.f32.mxu0 %vm317_vm2, %v292_v10 }
  0x26   : > { %943 = vmatmul.mubr.msk.f32.gmra.mrb[2].mxu0 %vm317_vm2, %v293_v11 }
  0x27   : > { %945 = vmatprep.mubr.msk.f32.mxu0 %vm317_vm2, %v294_v12 }
  0x2a   : > { %946 = vmatmul.mubr.msk.f32.gmra.mrb[4].mxu0 %vm317_vm2, %v295_v13 }
  0x2b   : > { %948 = vmatprep.mubr.msk.f32.mxu0 %vm317_vm2, %v296_v14 }
  0x2e   : > { %949 = vmatmul.mubr.msk.f32.gmra.mrb[6].mxu0 %vm317_vm2, %v297_v15 }
  0x2f   : > { %951 = vmatprep.mubr.msk.f32.mxu0 %vm317_vm2, %v298_v16 }
  0x32   : > { %952 = vmatmul.mubr.msk.f32.gmra.mrb[8].mxu0 %vm317_vm2, %v299_v17 }
  0x33   : > { %954 = vmatprep.mubr.msk.f32.mxu0 %vm317_vm2, %v300_v18 }
  0x36   : > { %955 = vmatmul.mubr.msk.f32.gmra.mrb[10].mxu0 %vm317_vm2, %v301_v19 }
  0x37   : > { %957 = vmatprep.mubr.msk.f32.mxu0 %vm317_vm2, %v302_v20 }
  0x3a   : > { %958 = vmatmul.mubr.msk.f32.gmra.mrb[12].mxu0 %vm317_vm2, %v303_v21 }
  0x3b   : > { %960 = vmatprep.mubr.msk.f32.mxu0 %vm317_vm2, %v304_v22 }
  0x3e   : > { %961 = vmatmul.mubr.msk.f32.gmra.mrb[14].mxu0 %vm317_vm2, %v305_v23 }
  0xf5   : > { %v941_v32 = vpop.f32.mrb[0].mxu0 }
  0xf6   : > { %v1269_v33 = vadd.f32 %v941_v32, %v1266_v31  ;;  %v432_v34 = vpop.f32.mrb[1].mxu0 }
  0xf7   : > { %v1272_v35 = vadd.f32 %v1266_v31, %v432_v34 }
  0xf8   : > { %v868_v36 = vmul.f32 -1.442695, %v1269_v33 }
  0xf9   : > { %v867_v37 = vmul.f32 -1.442695, %v1272_v35  ;;  %v944_v38 = vpop.f32.mrb[2].mxu0 }
  0xfa   : > { %1056 = vpow2.f32 %v868_v36  ;;  %v1277_v39 = vadd.f32 %v944_v38, %v1266_v31  ;;  %v442_v40 = vpop.f32.mrb[3].mxu0 }
  0xfb   : > { %1058 = vpow2.f32 %v867_v37  ;;  %v1280_v41 = vadd.f32 %v1266_v31, %v442_v40 }
  0xfc   : > { %v870_v42 = vmul.f32 -1.442695, %v1277_v39 }
  0xfd   : > { %v869_v43 = vmul.f32 -1.442695, %v1280_v41  ;;  %v947_v44 = vpop.f32.mrb[4].mxu0 }
  0xfe   : > { %1060 = vpow2.f32 %v870_v42  ;;  %v1285_v45 = vadd.f32 %v947_v44, %v1266_v31  ;;  %v452_v46 = vpop.f32.mrb[5].mxu0 }
  0xff   : > { %1062 = vpow2.f32 %v869_v43  ;;  %v1288_v47 = vadd.f32 %v1266_v31, %v452_v46 }
 0x100   : > { %v872_v48 = vmul.f32 -1.442695, %v1285_v45 }
 0x101   : > { %v871_v49 = vmul.f32 -1.442695, %v1288_v47  ;;  %v950_v50 = vpop.f32.mrb[6].mxu0 }
 0x102   : > { %1064 = vpow2.f32 %v872_v48  ;;  %v1293_v51 = vadd.f32 %v950_v50, %v1266_v31  ;;  %v462_v52 = vpop.f32.mrb[7].mxu0 }
 0x103   : > { %1066 = vpow2.f32 %v871_v49  ;;  %v1296_v53 = vadd.f32 %v1266_v31, %v462_v52 }
 0x104   : > { %v1057_v54 = vpop.eup %1056  ;;  %v874_v55 = vmul.f32 -1.442695, %v1293_v51 }
 0x105   : > { %v1059_v56 = vpop.eup %1058  ;;  %v560_v57 = vadd.f32 1.0, %v1057_v54  ;;  %v873_v58 = vmul.f32 -1.442695, %v1296_v53  ;;  %v953_v59 = vpop.f32.mrb[8].mxu0 }
 0x106   : > { %v559_v60 = vadd.f32 1.0, %v1059_v56  ;;  %1068 = vpow2.f32 %v874_v55  ;;  %v1301_v61 = vadd.f32 %v953_v59, %v1266_v31  ;;  %v472_v62 = vpop.f32.mrb[9].mxu0 }
 0x107   : > { %1070 = vrcp.f32 %v560_v57  ;;  %v1304_v63 = vadd.f32 %v1266_v31, %v472_v62 }
 0x108   : > { %v1061_v0 = vpop.eup %1060  ;;  %1072 = vrcp.f32 %v559_v60  ;;  %v876_v1 = vmul.f32 -1.442695, %v1301_v61 }
 0x109   : > { %v1063_v2 = vpop.eup %1062  ;;  %v562_v3 = vadd.f32 1.0, %v1061_v0  ;;  %1074 = vpow2.f32 %v873_v58  ;;  %v875_v4 = vmul.f32 -1.442695, %v1304_v63  ;;  %v956_v5 = vpop.f32.mrb[10].mxu0 }
 0x10a   : > { %v561_v6 = vadd.f32 1.0, %v1063_v2  ;;  %1076 = vpow2.f32 %v876_v1  ;;  %v1309_v7 = vadd.f32 %v956_v5, %v1266_v31  ;;  %v482_v8 = vpop.f32.mrb[11].mxu0 }
 0x10b   : > { %1078 = vrcp.f32 %v562_v3  ;;  %v1312_v9 = vadd.f32 %v1266_v31, %v482_v8 }
 0x10c   : > { %v1065_v10 = vpop.eup %1064  ;;  %1080 = vrcp.f32 %v561_v6  ;;  %v878_v11 = vmul.f32 -1.442695, %v1309_v7 }
 0x10d   : > { %v1067_v12 = vpop.eup %1066  ;;  %v564_v13 = vadd.f32 1.0, %v1065_v10  ;;  %1082 = vpow2.f32 %v875_v4  ;;  %v877_v14 = vmul.f32 -1.442695, %v1312_v9  ;;  %v959_v15 = vpop.f32.mrb[12].mxu0 }
 0x10e   : > { %v563_v16 = vadd.f32 1.0, %v1067_v12  ;;  %1084 = vpow2.f32 %v878_v11  ;;  %v1317_v17 = vadd.f32 %v959_v15, %v1266_v31  ;;  %v492_v18 = vpop.f32.mrb[13].mxu0 }
 0x10f   : > { %1086 = vrcp.f32 %v564_v13  ;;  %v1320_v19 = vadd.f32 %v1266_v31, %v492_v18 }
 0x110   : > { %v1069_v20 = vpop.eup %1068  ;;  %1088 = vrcp.f32 %v563_v16  ;;  %v880_v21 = vmul.f32 -1.442695, %v1317_v17 }
 0x111   : > { %v1071_v22 = vpop.eup %1070  ;;  %v566_v23 = vadd.f32 1.0, %v1069_v20  ;;  %1090 = vpow2.f32 %v877_v14  ;;  %v879_v25 = vmul.f32 -1.442695, %v1320_v19  ;;  %v962_v28 = vpop.f32.mrb[14].mxu0 }
 0x112   : > { %v1073_v29 = vpop.eup %1072  ;;  %v608_v30 = vmul.f32 %v1071_v22, %v1269_v33  ;;  %1092 = vpow2.f32 %v880_v21  ;;  %v1326_v32 = vadd.f32 %v962_v28, %v1266_v31  ;;  %v502_v34 = vpop.f32.mrb[15].mxu0 }
 0x113   : > { %v1075_v36 = vpop.eup %1074  ;;  %v607_v37 = vmul.f32 %v1073_v29, %v1272_v35  ;;  %1094 = vrcp.f32 %v566_v23  ;;  %v1330_v38 = vadd.f32 %v1266_v31, %v502_v34 }
 0x114   : > { %v1077_v40 = vpop.eup %1076  ;;  %v565_v42 = vadd.f32 1.0, %v1075_v36  ;;  %1096 = vpow2.f32 %v879_v25  ;;  %v882_v43 = vmul.f32 -1.442695, %v1326_v32  ;;  %v711_v36 = vpop.xlane.xlu0 %710 }
 0x115   : > { %v1079_v44 = vpop.eup %1078  ;;  %v568_v46 = vadd.f32 1.0, %v1077_v40  ;;  %v881_v33 = vmul.f32 -1.442695, %v1330_v38  ;;  %v1014_v48 = vpack.c.bf16 %v608_v30, %v607_v37  ;;  %v633_v40 = vld [vmem:[#allocation2] sm:$0x1f] }
 0x116   : > { %v1081_v49 = vpop.eup %1080  ;;  %v610_v50 = vmul.f32 %v1079_v44, %v1277_v39  ;;  %1098 = vrcp.f32 %v565_v42  ;;  %v1135_v44 = vmov (!%p886_p6), 0.0  }
 0x117   : > { %v1083_v52 = vpop.eup %1082  ;;  %v609_v35 = vmul.f32 %v1081_v49, %v1280_v41  ;;  %1100 = vrcp.f32 %v568_v46  ;;  %1015 = vmatpush3.bf16.msra.mxu1 %v1014_v48  ;;  %1002 = vmatprep.mubr.msk.f32.mxu0 (!%p886_p6), %vm1134_vm8, %v1135_v44  ;;  %v887_v48 = vld [vmem:[#allocation4] ss:$0 sm:$0xff] (!%p886_p6) }
 0x118   : > { %v1085_v31 = vpop.eup %1084  ;;  %v567_v54 = vadd.f32 1.0, %v1083_v52  ;;  %1102 = vpow2.f32 %v882_v43  ;;  %1016 = vmatprep.subr.bf16.mxu1 %v1129_v24 }
 0x119   : > { %v1087_v55 = vpop.eup %1086  ;;  %v570_v56 = vadd.f32 1.0, %v1085_v31  ;;  %1104 = vpow2.f32 %v881_v33  ;;  %v1017_v57 = vpack.c.bf16 %v610_v50, %v609_v35 }
 0x11a   : > { %v1089_v58 = vpop.eup %1088  ;;  %v612_v59 = vmul.f32 %v1087_v55, %v1285_v45  ;;  %1106 = vrcp.f32 %v567_v54 }
 0x11b   : > { %v1091_v39 = vpop.eup %1090  ;;  %v611_v60 = vmul.f32 %v1089_v58, %v1288_v47  ;;  %1108 = vrcp.f32 %v570_v56  ;;  %1018 = vmatpush3.bf16.msra.mxu1 %v1017_v57 }
 0x11c   : > { %v1093_v41 = vpop.eup %1092  ;;  %v569_v62 = vadd.f32 1.0, %v1091_v39  ;;  %1019 = vmatprep.subr.bf16.mxu1 %v1129_v24 }
 0x11d   : > { %v1095_v0 = vpop.eup %1094  ;;  %v572_v1 = vadd.f32 1.0, %v1093_v41  ;;  %v1020_v2 = vpack.c.bf16 %v612_v59, %v611_v60 }
 0x11e   : > { %v1097_v3 = vpop.eup %1096  ;;  %1110 = vrcp.f32 %v569_v62  ;;  %v614_v4 = vmul.f32 %v1095_v0, %v1293_v51 }
 0x11f   : > { %1112 = vrcp.f32 %v572_v1  ;;  %v571_v5 = vadd.f32 1.0, %v1097_v3  ;;  %1021 = vmatpush3.bf16.msra.mxu1 %v1020_v2 }
 0x120   : > { %v1099_v45 = vpop.eup %1098  ;;  %1022 = vmatprep.subr.bf16.mxu1 %v1129_v24 }
 0x121   : > { %v1101_v47 = vpop.eup %1100  ;;  %v613_v6 = vmul.f32 %v1099_v45, %v1296_v53  ;;  %1114 = vrcp.f32 %v571_v5 }
 0x122   : > { %v1103_v8 = vpop.eup %1102  ;;  %v616_v11 = vmul.f32 %v1101_v47, %v1301_v61 }
 0x123   : > { %v1105_v10 = vpop.eup %1104  ;;  %v574_v12 = vadd.f32 1.0, %v1103_v8  ;;  %v1023_v13 = vpack.c.bf16 %v614_v4, %v613_v6 }
 0x124   : > { %v1107_v14 = vpop.eup %1106  ;;  %v573_v15 = vadd.f32 1.0, %v1105_v10 }
 0x125   : > { %v1109_v16 = vpop.eup %1108  ;;  %v615_v51 = vmul.f32 %v1107_v14, %v1304_v63  ;;  %1116 = vrcp.f32 %v574_v12  ;;  %1024 = vmatpush3.bf16.msra.mxu1 %v1023_v13 }
 0x126   : > { %1118 = vrcp.f32 %v573_v15  ;;  %1025 = vmatprep.subr.bf16.mxu1 %v1129_v24  ;;  %v618_v18 = vmul.f32 %v1109_v16, %v1309_v7 }
 0x127   : > { %v1026_v53 = vpack.c.bf16 %v616_v11, %v615_v51 }
 0x128   : > { %v1111_v20 = vpop.eup %1110 }
 0x129   : > { %v1113_v21 = vpop.eup %1112  ;;  %v617_v22 = vmul.f32 %v1111_v20, %v1312_v9  ;;  %1027 = vmatpush3.bf16.msra.mxu1 %v1026_v53 }
 0x12a   : > { %v620_v61 = vmul.f32 %v1113_v21, %v1317_v17  ;;  %1028 = vmatprep.subr.bf16.mxu1 %v1129_v24  ;;  %v1132_v17 = vmov 1.0  }
 0x12b   : > { %v1115_v23 = vpop.eup %1114  ;;  %v1029_v25 = vpack.c.bf16 %v618_v18, %v617_v22 }
 0x12c   : > { %v619_v63 = vmul.f32 %v1115_v23, %v1320_v19  ;;  %v707_v19 = vld [vmem:[#allocation3] sm:$0x1f] }
 0x12d   : > { %1030 = vmatpush3.bf16.msra.mxu1 %v1029_v25  ;;  %v712_v37 = vadd.f32 %v711_v36, %v707_v19 }
 0x12e   : > { %1031 = vmatprep.subr.bf16.mxu1 %v1129_v24  ;;  %v1032_v28 = vpack.c.bf16 %v620_v61, %v619_v63 }
 0x12f   : > { %v1117_v29 = vpop.eup %1116  ;;  %714 = vst.msk [vmem:[#allocation3] sm:$0x1f] %vm713_vm6, %v712_v37 }
 0x130   : > { %v1119_v7 = vpop.eup %1118  ;;  %v622_v30 = vmul.f32 %v1117_v29, %v1326_v32 }
 0x131   : > { %v621_v34 = vmul.f32 %v1119_v7, %v1330_v38  ;;  %1033 = vmatpush3.bf16.msra.mxu1 %v1032_v28 }
 0x132   : > { %1034 = vmatprep.subr.bf16.mxu1 %v1129_v24  ;;  %v720_v24 = vld [vmem:[%s1377_s4] sm:$0xff] (!%p886_p6) }
 0x133   : > { %v1035_v9 = vpack.c.bf16 %v622_v30, %v621_v34  ;;  %v1038_v43 = vpack.c.bf16 (!%p886_p6), %v721_v26, %v720_v24 }
 0x135   : > { %1036 = vmatpush3.bf16.msra.mxu1 %v1035_v9  ;;  %1039 = vmatpush3.bf16.msra.mxu0 (!%p886_p6), %v1038_v43 }
 0x136   : > { %v722_v33 = vld [vmem:[#allocation3] sm:$0x1f] (!%p886_p6) }
 0x137   : > { %v730_v49 = vmul.f32 (!%p886_p6), %v887_v48, %v722_v33 }
 0x138   : > { %996 = vmatmul.mubr.msk.f32.vlgmr.msra.gmra.mrb[0].mxu1 %vm630_vm4, %v1132_v17 }
 0x208   : > { %718 = sbr.rel (%p886_p6) target bundleno = 749 (0x2ed), region = 56 }
 0x20b   : > { %v700_v32 = vpop.f32.mrb[0].mxu1 }
 0x20c   : > { %v704_v38 = vadd.f32 %v700_v32, %v633_v40  ;;  %v997_v42 = vpop.f32.mrb[1].mxu1 }
 0x20e   : > { %706 = vst.msk [vmem:[#allocation2] sm:$0x1f] %vm705_vm7, %v704_v38 }
 0x215   : > { %v719_v46 = vld [vmem:[#allocation2] sm:$0x1f] }
 0x216   : > { %1003 = vmatmul.mubr.msk.f32.vlgmr.msra.gmra.mrb[0].mxu0 %vm731_vm9, %v719_v46 }
 0x2e9   : > { %v801_v50 = vpop.f32.mrb[0].mxu0 }
 0x2ea   : > { %v802_v52 = vadd.f32 %v801_v50, %v730_v49  ;;  %v1004_v35 = vpop.f32.mrb[1].mxu0 }
 0x2ec   : > { %805 = vst.msk [vmem:[%s1380_s7] sm:$0x1f] %vm713_vm6, %v802_v52 }
 0x2ed PF: > { %s19_s26 = sadd.s32 1, %s1126_s26  }
 0x2ee   : > { %p16_p7 = scmp.ge.s32.totalorder %s19_s26, 5  }
 0x2f0   :  { %18 = sbr.rel (!%p16_p7) target bundleno = 3 (0x3), region = 85 }

</bundles_post_ra>
